<compile_context>
chip_gen: v6e
topology: v6e:2x2x1
jax: 0.10.0
libtpu: 0.0.40
codegen_flags: <defaults>
</compile_context>

<pallas_src>
import functools

import jax
import jax.numpy as jnp
from jax import lax
from jax.experimental import pallas as pl
from jax.experimental.pallas import tpu as pltpu


def _round_up(n, m):
    return ((n + m - 1) // m) * m


def _biaffine_kernel(x_ref, u_ref, y_ref, o_ref, *, out_size, kj):
    # x_ref: (1, TM, K)  bf16      u_ref: (K, O*Kj) bf16
    # y_ref: (1, S,  Kj) bf16      o_ref: (1, O, TM, S) f32
    xb = x_ref[0]                                   # (TM, K)
    yb = y_ref[0]                                   # (S,  Kj)

    # One wide GEMM covering all output classes at once: (TM, K) @ (K, O*Kj).
    tmp = jnp.dot(xb, u_ref[...], preferred_element_type=jnp.float32)
    tmp = tmp.astype(jnp.bfloat16)                  # (TM, O*Kj)

    # Unrolled (small O) loop; contract on the shared last dim -> no Y^T.
    for o in range(out_size):
        t_o = tmp[:, o * kj:(o + 1) * kj]           # (TM, Kj), 128-aligned slice
        tile = lax.dot_general(
            t_o, yb,
            dimension_numbers=(((1,), (1,)), ((), ())),
            preferred_element_type=jnp.float32)     # (TM, S)
        o_ref[0, o] = tile.astype(o_ref.dtype)


def biaffine_forward(x, y, U, bias_x=True, bias_y=True, lane_pad=128):
    """x, y: (B, S, D) float32; U: (D + bias_x, O, D + bias_y).
    Returns (B, S, S, O), matching torch.einsum('bxi,ioj,byj->bxyo')."""
    if bias_x:
        x = jnp.concatenate([x, jnp.ones_like(x[..., :1])], axis=-1)
    if bias_y:
        y = jnp.concatenate([y, jnp.ones_like(y[..., :1])], axis=-1)

    B, S, I = x.shape
    _, _, J = y.shape
    Iu, O, Ju = U.shape
    assert (I, J) == (Iu, Ju)

    # Zero-pad contraction dims to lane-aligned multiples (exact: padded U is 0).
    K = _round_up(I, lane_pad)
    Kj = _round_up(J, lane_pad)
    xp = jnp.pad(x, ((0, 0), (0, 0), (0, K - I))).astype(jnp.bfloat16)
    yp = jnp.pad(y, ((0, 0), (0, 0), (0, Kj - J))).astype(jnp.bfloat16)
    # One-time parameter prep: contiguous (K, O*Kj) slab, column = o*Kj + j.
    u_flat = jnp.pad(U, ((0, K - I), (0, 0), (0, Kj - J)))
    u_flat = u_flat.reshape(K, O * Kj).astype(jnp.bfloat16)

    # Tile the query dim for large S (keeps v7x under its 64 MiB VMEM budget);
    # for small S the whole sequence is one tile.
    tm = 256 if (S > 256 and S % 256 == 0) else S
    num_m = S // tm

    kernel = functools.partial(_biaffine_kernel, out_size=O, kj=Kj)

    out_boss = pl.pallas_call(
        kernel,
        out_shape=jax.ShapeDtypeStruct((B, O, S, S), jnp.float32),
        grid_spec=pl.GridSpec(
            grid=(B, num_m),
            in_specs=[
                pl.BlockSpec((1, tm, K), lambda b, m: (b, m, 0)),     # x tile
                pl.BlockSpec((K, O * Kj), lambda b, m: (0, 0)),       # U (whole)
                pl.BlockSpec((1, S, Kj), lambda b, m: (b, 0, 0)),     # y (whole seq)
            ],
            out_specs=pl.BlockSpec((1, O, tm, S), lambda b, m: (b, 0, m, 0)),
        ),
        compiler_params=pltpu.CompilerParams(
            dimension_semantics=("parallel", "parallel"),
        ),
    )(xp, u_flat, yp)

    # (B, O, S, S) -> (B, S, S, O) to match the PyTorch 'bxyo' convention.
    # TODO(synk): if the downstream consumer can take the lane-dense
    # (B, O, S, S) layout, drop this transpose to avoid re-streaming the
    # full output tensor through HBM.
    return jnp.transpose(out_boss, (0, 2, 3, 1))


if __name__ == "__main__":
    # Small shapes consistent with the module: (bsz, max_length, dim)
    B, S, D, OUT = 2, 8, 32, 4
    key = jax.random.PRNGKey(0)
    kx, ky, ku = jax.random.split(key, 3)

    x = jax.random.normal(kx, (B, S, D), dtype=jnp.float32)
    y = jax.random.normal(ky, (B, S, D), dtype=jnp.float32)
    # Parameter from __init__: torch.randn(in_size + 1, out_size, in_size + 1)
    U = jax.random.normal(ku, (D + 1, OUT, D + 1), dtype=jnp.float32)

    out = biaffine_forward(x, y, U, bias_x=True, bias_y=True)
    out = jax.block_until_ready(out)

    # Reference check (plain JAX einsum in f32, same math as the torch module).
    xb = jnp.concatenate([x, jnp.ones_like(x[..., :1])], axis=-1)
    yb = jnp.concatenate([y, jnp.ones_like(y[..., :1])], axis=-1)
    ref = jnp.einsum("bxi,ioj,byj->bxyo", xb, U, yb)

    assert out.shape == (B, S, S, OUT)
    # bf16 MXU inputs with f32 accumulation: check normalized max error.
    err = jnp.max(jnp.abs(out - ref)) / (jnp.max(jnp.abs(ref)) + 1e-6)
    assert err < 3e-2, f"normalized max error too large: {err}"

    print("KERNEL_OK")
</pallas_src>

<mosaic_0001>
module attributes {stable_mosaic.version = 11 : i64} {
  func.func @_biaffine_kernel(%arg0: i32, %arg1: i32, %arg2: memref<1x8x128xbf16, #tpu.memory_space<vmem>>, %arg3: memref<128x512xbf16, #tpu.memory_space<vmem>>, %arg4: memref<1x8x128xbf16, #tpu.memory_space<vmem>>, %arg5: memref<1x4x8x8xf32, #tpu.memory_space<vmem>>) attributes {dimension_semantics = [#tpu.dimension_semantics<parallel>, #tpu.dimension_semantics<parallel>], iteration_bounds = array<i64: 2, 1>, scalar_prefetch = 0 : i64, scratch_operands = 0 : i64, tpu.core_type = #tpu.core_type<tc>, window_params = [{transform_indices = @transform_0, window_bounds = array<i64: 1, 8, 128>}, {pipeline_mode = #tpu.pipeline_mode<synchronous>, transform_indices = @transform_1, window_bounds = array<i64: 128, 512>}, {transform_indices = @transform_2, window_bounds = array<i64: 1, 8, 128>}, {transform_indices = @transform_3, window_bounds = array<i64: 1, 4, 8, 8>}]} {
    %c0 = arith.constant 0 : index
    %c0_0 = arith.constant 0 : index
    %c0_1 = arith.constant 0 : index
    %0 = vector.load %arg2[%c0, %c0_0, %c0_1] : memref<1x8x128xbf16, #tpu.memory_space<vmem>>, vector<1x8x128xbf16>
    %1 = vector.shape_cast %0 : vector<1x8x128xbf16> to vector<8x128xbf16>
    %c0_2 = arith.constant 0 : index
    %c0_3 = arith.constant 0 : index
    %c0_4 = arith.constant 0 : index
    %2 = vector.load %arg4[%c0_2, %c0_3, %c0_4] : memref<1x8x128xbf16, #tpu.memory_space<vmem>>, vector<1x8x128xbf16>
    %3 = vector.shape_cast %2 : vector<1x8x128xbf16> to vector<8x128xbf16>
    %c0_5 = arith.constant 0 : index
    %c0_6 = arith.constant 0 : index
    %4 = vector.load %arg3[%c0_5, %c0_6] : memref<128x512xbf16, #tpu.memory_space<vmem>>, vector<128x512xbf16>
    %cst = arith.constant dense<0.000000e+00> : vector<8x512xf32>
    %5 = tpu.matmul %1, %4, %cst {dimension_numbers = #tpu.dot_dimension_numbers<[1], [0], [0], [1], [0, 0, 1, 1], [], []>} : vector<8x128xbf16>, vector<128x512xbf16>, vector<8x512xf32> -> vector<8x512xf32>
    %6 = arith.truncf %5 : vector<8x512xf32> to vector<8x512xbf16>
    %7 = vector.extract_strided_slice %6 {offsets = [0, 0], sizes = [8, 128], strides = [1, 1]} : vector<8x512xbf16> to vector<8x128xbf16>
    %cst_7 = arith.constant dense<0.000000e+00> : vector<8x8xf32>
    %8 = tpu.matmul %7, %3, %cst_7 {dimension_numbers = #tpu.dot_dimension_numbers<[1], [1], [0], [0], [0, 0, 1, 0], [], []>} : vector<8x128xbf16>, vector<8x128xbf16>, vector<8x8xf32> -> vector<8x8xf32>
    %c0_8 = arith.constant 0 : index
    %c0_9 = arith.constant 0 : index
    %c0_10 = arith.constant 0 : index
    %c0_11 = arith.constant 0 : index
    %9 = vector.load %arg5[%c0_8, %c0_9, %c0_10, %c0_11] : memref<1x4x8x8xf32, #tpu.memory_space<vmem>>, vector<1x1x8x8xf32>
    %10 = vector.shape_cast %9 : vector<1x1x8x8xf32> to vector<8x8xf32>
    %11 = vector.shape_cast %8 : vector<8x8xf32> to vector<1x1x8x8xf32>
    tpu.vector_store %arg5[%c0_8, %c0_9, %c0_10, %c0_11], %11 {strides = array<i32>} : memref<1x4x8x8xf32, #tpu.memory_space<vmem>>, vector<1x1x8x8xf32>,
    %12 = vector.extract_strided_slice %6 {offsets = [0, 128], sizes = [8, 128], strides = [1, 1]} : vector<8x512xbf16> to vector<8x128xbf16>
    %cst_12 = arith.constant dense<0.000000e+00> : vector<8x8xf32>
    %13 = tpu.matmul %12, %3, %cst_12 {dimension_numbers = #tpu.dot_dimension_numbers<[1], [1], [0], [0], [0, 0, 1, 0], [], []>} : vector<8x128xbf16>, vector<8x128xbf16>, vector<8x8xf32> -> vector<8x8xf32>
    %c0_13 = arith.constant 0 : index
    %c1 = arith.constant 1 : index
    %c0_14 = arith.constant 0 : index
    %c0_15 = arith.constant 0 : index
    %14 = vector.load %arg5[%c0_13, %c1, %c0_14, %c0_15] : memref<1x4x8x8xf32, #tpu.memory_space<vmem>>, vector<1x1x8x8xf32>
    %15 = vector.shape_cast %14 : vector<1x1x8x8xf32> to vector<8x8xf32>
    %16 = vector.shape_cast %13 : vector<8x8xf32> to vector<1x1x8x8xf32>
    tpu.vector_store %arg5[%c0_13, %c1, %c0_14, %c0_15], %16 {strides = array<i32>} : memref<1x4x8x8xf32, #tpu.memory_space<vmem>>, vector<1x1x8x8xf32>,
    %17 = vector.extract_strided_slice %6 {offsets = [0, 256], sizes = [8, 128], strides = [1, 1]} : vector<8x512xbf16> to vector<8x128xbf16>
    %cst_16 = arith.constant dense<0.000000e+00> : vector<8x8xf32>
    %18 = tpu.matmul %17, %3, %cst_16 {dimension_numbers = #tpu.dot_dimension_numbers<[1], [1], [0], [0], [0, 0, 1, 0], [], []>} : vector<8x128xbf16>, vector<8x128xbf16>, vector<8x8xf32> -> vector<8x8xf32>
    %c0_17 = arith.constant 0 : index
    %c2 = arith.constant 2 : index
    %c0_18 = arith.constant 0 : index
    %c0_19 = arith.constant 0 : index
    %19 = vector.load %arg5[%c0_17, %c2, %c0_18, %c0_19] : memref<1x4x8x8xf32, #tpu.memory_space<vmem>>, vector<1x1x8x8xf32>
    %20 = vector.shape_cast %19 : vector<1x1x8x8xf32> to vector<8x8xf32>
    %21 = vector.shape_cast %18 : vector<8x8xf32> to vector<1x1x8x8xf32>
    tpu.vector_store %arg5[%c0_17, %c2, %c0_18, %c0_19], %21 {strides = array<i32>} : memref<1x4x8x8xf32, #tpu.memory_space<vmem>>, vector<1x1x8x8xf32>,
    %22 = vector.extract_strided_slice %6 {offsets = [0, 384], sizes = [8, 128], strides = [1, 1]} : vector<8x512xbf16> to vector<8x128xbf16>
    %cst_20 = arith.constant dense<0.000000e+00> : vector<8x8xf32>
    %23 = tpu.matmul %22, %3, %cst_20 {dimension_numbers = #tpu.dot_dimension_numbers<[1], [1], [0], [0], [0, 0, 1, 0], [], []>} : vector<8x128xbf16>, vector<8x128xbf16>, vector<8x8xf32> -> vector<8x8xf32>
    %c0_21 = arith.constant 0 : index
    %c3 = arith.constant 3 : index
    %c0_22 = arith.constant 0 : index
    %c0_23 = arith.constant 0 : index
    %24 = vector.load %arg5[%c0_21, %c3, %c0_22, %c0_23] : memref<1x4x8x8xf32, #tpu.memory_space<vmem>>, vector<1x1x8x8xf32>
    %25 = vector.shape_cast %24 : vector<1x1x8x8xf32> to vector<8x8xf32>
    %26 = vector.shape_cast %23 : vector<8x8xf32> to vector<1x1x8x8xf32>
    tpu.vector_store %arg5[%c0_21, %c3, %c0_22, %c0_23], %26 {strides = array<i32>} : memref<1x4x8x8xf32, #tpu.memory_space<vmem>>, vector<1x1x8x8xf32>,
    return
  }
  func.func @transform_0(%arg0: i32, %arg1: i32) -> (i32, i32, i32) {
    %c0_i32 = arith.constant 0 : i32
    %c0_i32_0 = arith.constant 0 : i32
    return %arg0, %arg1, %c0_i32 : i32, i32, i32
  }
  func.func @transform_1(%arg0: i32, %arg1: i32) -> (i32, i32) {
    %c0_i32 = arith.constant 0 : i32
    %c0_i32_0 = arith.constant 0 : i32
    %c0_i32_1 = arith.constant 0 : i32
    return %c0_i32, %c0_i32_0 : i32, i32
  }
  func.func @transform_2(%arg0: i32, %arg1: i32) -> (i32, i32, i32) {
    %c0_i32 = arith.constant 0 : i32
    %c0_i32_0 = arith.constant 0 : i32
    %c0_i32_1 = arith.constant 0 : i32
    return %arg0, %c0_i32, %c0_i32_0 : i32, i32, i32
  }
  func.func @transform_3(%arg0: i32, %arg1: i32) -> (i32, i32, i32, i32) {
    %c0_i32 = arith.constant 0 : i32
    %c0_i32_0 = arith.constant 0 : i32
    %c0_i32_1 = arith.constant 0 : i32
    return %arg0, %c0_i32, %arg1, %c0_i32_0 : i32, i32, i32, i32
  }
}

</mosaic_0001>

<bundles_post_ra>
// kernel: tpu_custom_call.1
= control target key start
LH: loop header
LB: loop body
LE: loop exit
PB: predicated region body
PF: predicated region fallthrough
CT: control target
= control target key end

     0   :  { %8 = vsyncpa [#allocation3], 0  ;;  %s1478_s0 = inlined_call_operand.hbm [shape: bf16[2,8,128], index: 0, kind: input, shape index: {}]   ;;  %s1479_s1 = inlined_call_operand.hbm [shape: bf16[128,512], index: 1, kind: input, shape index: {}]   ;;  %s1480_s2 = inlined_call_operand.hbm [shape: bf16[2,8,128], index: 2, kind: input, shape index: {}]   ;;  %s1481_s3 = inlined_call_operand.hbm [shape: f32[2,4,8,8], index: 3, kind: output, shape index: {}]  }
   0x1   :  { %10 = vsyncpa [#allocation3 + $0x1], 0 }
   0x2   :  { %11 = vsyncpa [#allocation6], 0 }
   0x3   :  { %12 = vsyncpa [#allocation4], 0 }
   0x4   :  { %14 = vsyncpa [#allocation4 + $0x1], 0  ;;  %s1253_s12 = smov 0   ;;  %s1255_s13 = smov 0  }
   0x5   :  { %s1257_s14 = smov 0   ;;  %s1259_s15 = smov 0  }
   0x6   :  { %s1261_s16 = smov 0   ;;  %s1263_s17 = smov 0  }
   0x7 LB: > { %s32_s18 = sadd.s32 1, %s1216_s16  ;;  %s41_s19 = sadd.s32 1, %s1208_s14  ;;  %s1220_s17 = sphi %s1263_s17, %s20_s17   ;;  %s1216_s16 = sphi %s1261_s16, %s1501_s16   ;;  %s1212_s15 = sphi %s1259_s15, %s1500_s15   ;;  %s1208_s14 = sphi %s1257_s14, %s1499_s14   ;;  %s1204_s13 = sphi %s1255_s13, %s1498_s13   ;;  %s1200_s12 = sphi %s1253_s12, %s1497_s12  }
   0x8   : > { %p34_p0 = scmp.ge.s32.totalorder %s32_s18, 2  ;;  %p48_p1 = scmp.ne.s32.totalorder %s1208_s14, %s1204_s13 }
   0x9   : > { %p49_p2 = scmp.eq.s32.totalorder %s1220_s17, 0  ;;  %p943_p5 = scmp.lt.s32.totalorder %s1220_s17, 2 }
   0xa   : > { %s1503_s18 = smov (%p34_p0, %s32_s18), 0  ;;  %s166_s21 = sand.u32 1, %s1220_s17  }
   0xb   : > { %p50_p4 = por %p49_p2, %p48_p1  ;;  %s36_s20 = ssub.s32 %s1216_s16, %s1503_s18 }
   0xc   : > { %p39_p6 = scmp.eq.s32.totalorder %s36_s20, 0  ;;  %s168_s22 = sand.u32 1, %s1208_s14  }
   0xd   : > { %s836_s23 = sshll.u32 %s1216_s16, 6  ;;  %s1303_s25 = sshll.u32 %s168_s22, 2 }
   0xe   : > { %s1301_s24 = scalar_select %p39_p6, %s1208_s14, %s41_s19  }
   0xf   : > { %s176_s28 = scalar_lea.hbm %s1478_s0, %s836_s23  ;;  %p1310_p7 = pnand %p943_p5, %p50_p4 }
  0x10   : > { %s170_s30 = scalar_lea.vmem [#allocation2], %s1303_s25  ;;  %s1315_s5 = scalar_lea.sflag [#allocation3], %s166_s21 }
  0x11   : > { %s178_s4 = sshll.u32 %s170_s30, 4  ;;  %p1052_p8 = pneg %p1310_p7  ;;  %s179_s4 = int_to_ptr.vmem [resolvable:$true] %s178_s4 }
  0x12   : > { %s1063_s6 = scalar_lea.vmem %s179_s4, 64  ;;  %s1222_s7 = smov [#allocation2]  }
  0x13   : > { %p1064_p9 = scmp.ne.s32.totalorder %s179_s4, %s1063_s6  ;;  %s1068_s8 = sshll.u32 %s1222_s7, 4  ;;  %s1069_s8 = int_to_ptr.vmem [resolvable:$false] %s1068_s8 }
  0x14   : > { %s1070_s9 = scalar_lea.vmem %s1069_s8, 128  ;;  %p1071_p12 = scmp.lt.s32.totalorder %s179_s4, %s1069_s8 }
  0x15   : > { %p1066_p10 = pnand %p1064_p9, %p1052_p8  ;;  %p1072_p13 = scmp.lt.s32.totalorder %s1070_s9, %s1063_s6 }
  0x17   : > { %p1067_p11 = pneg %p1066_p10  ;;  %p1073_p0 = por %p1072_p13, %p1071_p12 }
  0x19   : > { %p1074_p2 = pnand %p1073_p0, %p1067_p11 }
  0x1b   : > { %1077 = shalt.err (!%p1074_p2)
}
  0x1c   : > { %934 = dma.hbm_to_vmem [thread:$0]  (!%p1310_p7), %s176_s28, 64, %s179_s4, %s1315_s5  }
  0x1d   : > { %s1326_s10 = sadd.s32 4294967295, %s1220_s17   ;;  %s831_s11 = sadd.s32 4294967294, %s1220_s17  }
  0x1e   : > { %p54_p4 = scmp.ne.s32.totalorder %s1204_s13, %s1200_s12  ;;  %p1483_p5 = scmp.eq.s32.totalorder %s1326_s10, 0 }
  0x1f   : > { %p127_p6 = scmp.eq.s32.totalorder %s1326_s10, 1  ;;  %p133_p9 = scmp.eq.s32.totalorder %s831_s11, 1 }
  0x20   : > { %p832_p10 = scmp.ge.s32.totalorder %s1220_s17, 1  ;;  %p1336_p11 = por %p1483_p5, %p54_p4 }
  0x21   : > { %p1343_p12 = por %p127_p6, %p48_p1  ;;  %p1347_p13 = por %p133_p9, %p54_p4 }
  0x22   : > { %s1486_s19 = scalar_select %p1336_p11, 1, 0 }
  0x23   : > { %s1487_s20 = scalar_select %p1343_p12, 1, 0 }
  0x24   : > { %s1488_s21 = scalar_select %p1347_p13, 1, 0 }
  0x25   : > { %p140_p0 = scmp.lt.s32.totalorder %s1220_s17, 3  ;;  %s1223_s26 = smov [#allocation5]  }
  0x26   : > { %s152_s27 = sshll.u32 %s1223_s26, 4  ;;  %s194_s4 = scalar_lea.hbm %s1480_s2, %s836_s23  ;;  %s1361_s27 = int_to_ptr.vmem [resolvable:$true] %s152_s27 }
  0x27   : > { %p1352_p2 = pnand %p832_p10, %p140_p0  ;;  %s189_s6 = scalar_lea.vmem [#allocation7], %s1303_s25 }
  0x28   : > { %s196_s7 = sshll.u32 %s189_s6, 4  ;;  %s1224_s11 = smov [#allocation7]   ;;  %s197_s7 = int_to_ptr.vmem [resolvable:$true] %s196_s7 }
  0x29   : > { %p927_p1 = pneg %p1352_p2  ;;  %s1091_s9 = scalar_lea.vmem %s197_s7, 64 }
  0x2a   : > { %p1092_p6 = scmp.ne.s32.totalorder %s197_s7, %s1091_s9  ;;  %s1096_s23 = sshll.u32 %s1224_s11, 4  ;;  %s1097_s23 = int_to_ptr.vmem [resolvable:$false] %s1096_s23 }
  0x2b   : > { %p1368_p4 = pnand %p927_p1, %p1483_p5  ;;  %s1098_s26 = scalar_lea.vmem %s1097_s23, 128 }
  0x2c   : > { %p1094_p9 = pnand %p1092_p6, %p1052_p8  ;;  %p1099_p0 = scmp.lt.s32.totalorder %s197_s7, %s1097_s23 }
  0x2d   : > { %p1100_p3 = scmp.lt.s32.totalorder %s1098_s26, %s1091_s9 }
  0x2e   : > { %p1095_p10 = pneg %p1094_p9 }
  0x2f   : > { %p1101_p13 = por %p1100_p3, %p1099_p0 }
  0x31   : > { %p1102_p12 = pnand %p1101_p13, %p1095_p10 }
  0x33   : > { %1105 = shalt.err (!%p1102_p12)
}
  0x34   : > { %937 = dma.hbm_to_vmem [thread:$0]  (!%p1310_p7), %s194_s4, 64, %s197_s7, %s1315_s5  }
  0x35   : > { %p1108_p8 = pneg %p1368_p4  ;;  %s1117_s25 = scalar_lea.vmem %s1361_s27, 4096 }
  0x36   : > { %p1118_p1 = scmp.ne.s32.totalorder %s1361_s27, %s1117_s25  ;;  %p1125_p5 = scmp.lt.s32.totalorder %s1361_s27, %s1361_s27 }
  0x37   : > { %p1126_p11 = scmp.lt.s32.totalorder %s1117_s25, %s1117_s25 }
  0x38   : > { %p1120_p6 = pnand %p1118_p1, %p1108_p8 }
  0x39   : > { %p1127_p3 = por %p1126_p11, %p1125_p5 }
  0x3a   : > { %p1121_p9 = pneg %p1120_p6 }
  0x3c   : > { %p1128_p13 = pnand %p1127_p3, %p1121_p9 }
  0x3e   : > { %1131 = shalt.err (!%p1128_p13)
}
  0x3f   : > { %s1225_s28 = smov 256   ;;  %s1226_s29 = smov 16  }
  0x40   : > { %930 = dma.hbm_to_vmem [thread:$0]  (!%p1368_p4), %s1479_s1, 4096, %s1361_s27, [#allocation6], %s1225_s28, %s1225_s28, %s1226_s29  }
  0x41   : > { %205 = sbr.rel (%p1352_p2) target bundleno = 525 (0x20d), region = 32  ;;  %s207_s5 = sand.u32 (!%p1352_p2), 1, %s1326_s10  }
  0x42   : > { %s1394_s4 = sand.u32 (!%p1352_p2), 1, %s1204_s13   ;;  %s208_s9 = scalar_lea.sflag (!%p1352_p2), [#allocation3], %s207_s5 }
  0x43   : > { %s840_s7 = sshll.u32 (!%p1352_p2), %s1394_s4, 2  ;;  %p1491_p7 = scmp.ne.s32.totalorder (!%p1352_p2), %s1486_s19, 0 }
  0x44   : > { %s1397_s11 = scalar_lea.vmem (!%p1352_p2), [#allocation2], %s840_s7 }
  0x46   : > { %1183 = dma.done.wait (%p1491_p7), %s208_s9, 64  }
  0x47   : > { %1185 = vsyncadd (%p1491_p7), %s208_s9, 4294967232  ;;  %p1492_p5 = scmp.eq.s32.totalorder %s1326_s10, 0 }
  0x49   : > { %1187 = dma.done.wait (%p1492_p5), [#allocation6], 4096   ;;  %p1493_p11 = pmov %p1492_p5 }
  0x4a   : > { %s1407_s22 = scalar_lea.vmem [#allocation7], %s840_s7 }
  0x4b   : > { %1189 = vsyncadd (%p1493_p11), [#allocation6], 4294963200 }
  0x4c   : > { %1191 = dma.done.wait (%p1491_p7), %s208_s9, 64  }
  0x4d   : > { %1193 = vsyncadd (%p1491_p7), %s208_s9, 4294967232  ;;  %v1227_v0 = vmov 0   ;;  %v1002_v1 = vld [vmem:[#allocation5 + $0xe4] ss:$16 sps:$4 sm:$0xff]   ;;  %v1004_v2 = vld [vmem:[#allocation5 + $0xe0] ss:$16 sps:$4 sm:$0xff]  }
  0x4e   : > { %479 = vmatprep.mubr.bf16.mxu0 %v1227_v0  ;;  %520 = vmatprep.mubr.bf16.mxu1 %v1227_v0  ;;  %v1005_v3 = vld [vmem:[#allocation5 + $0xec] ss:$16 sps:$4 sm:$0xff]   ;;  %v1007_v4 = vld [vmem:[#allocation5 + $0xe8] ss:$16 sps:$4 sm:$0xff]   ;;  %v1008_v5 = vld [vmem:[#allocation5 + $0xc4] ss:$16 sps:$4 sm:$0xff]  }
  0x4f   : > { %447 = vmatprep.subr.bf16.mxu0 %v1002_v1  ;;  %v1010_v6 = vld [vmem:[#allocation5 + $0xc0] ss:$16 sps:$4 sm:$0xff]   ;;  %488 = vmatprep.subr.bf16.mxu1 %v1005_v3  ;;  %v1011_v7 = vld [vmem:[#allocation5 + $0xcc] ss:$16 sps:$4 sm:$0xff]   ;;  %v1013_v8 = vld [vmem:[#allocation5 + $0xc8] ss:$16 sps:$4 sm:$0xff]  }
  0x50   : > { %448 = vmatpush1.bf16.msra.mxu0 %v1004_v2  ;;  %489 = vmatpush1.bf16.msra.mxu1 %v1007_v4  ;;  %v1014_v9 = vld [vmem:[#allocation5 + $0xa4] ss:$16 sps:$4 sm:$0xff]   ;;  %v1016_v10 = vld [vmem:[#allocation5 + $0xa0] ss:$16 sps:$4 sm:$0xff]   ;;  %v1017_v11 = vld [vmem:[#allocation5 + $0xac] ss:$16 sps:$4 sm:$0xff]  }
  0x51   : > { %449 = vmatprep.subr.bf16.mxu0 %v1008_v5  ;;  %490 = vmatprep.subr.bf16.mxu1 %v1011_v7  ;;  %v1020_v12 = vld [vmem:[#allocation5 + $0x84] ss:$16 sps:$4 sm:$0xff]   ;;  %v1019_v13 = vld [vmem:[#allocation5 + $0xa8] ss:$16 sps:$4 sm:$0xff]   ;;  %v1023_v14 = vld [vmem:[#allocation5 + $0x8c] ss:$16 sps:$4 sm:$0xff]  }
  0x52   : > { %v1022_v15 = vld [vmem:[#allocation5 + $0x80] ss:$16 sps:$4 sm:$0xff]   ;;  %v1026_v16 = vld [vmem:[#allocation5 + $0x64] ss:$16 sps:$4 sm:$0xff]   ;;  %v1025_v17 = vld [vmem:[#allocation5 + $0x88] ss:$16 sps:$4 sm:$0xff]  }
  0x53   : > { %v1029_v18 = vld [vmem:[#allocation5 + $0x6c] ss:$16 sps:$4 sm:$0xff]   ;;  %v1028_v19 = vld [vmem:[#allocation5 + $0x60] ss:$16 sps:$4 sm:$0xff]   ;;  %v1032_v20 = vld [vmem:[#allocation5 + $0x44] ss:$16 sps:$4 sm:$0xff]  }
  0x54   : > { %450 = vmatpush1.bf16.msra.mxu0 %v1010_v6  ;;  %491 = vmatpush1.bf16.msra.mxu1 %v1013_v8  ;;  %v1031_v21 = vld [vmem:[#allocation5 + $0x68] ss:$16 sps:$4 sm:$0xff]   ;;  %v1035_v22 = vld [vmem:[#allocation5 + $0x4c] ss:$16 sps:$4 sm:$0xff]   ;;  %v1034_v23 = vld [vmem:[#allocation5 + $0x40] ss:$16 sps:$4 sm:$0xff]  }
  0x55   : > { %451 = vmatprep.subr.bf16.mxu0 %v1014_v9  ;;  %492 = vmatprep.subr.bf16.mxu1 %v1017_v11  ;;  %v1038_v24 = vld [vmem:[#allocation5 + $0x24] ss:$16 sps:$4 sm:$0xff]   ;;  %v1037_v25 = vld [vmem:[#allocation5 + $0x48] ss:$16 sps:$4 sm:$0xff]   ;;  %v1041_v26 = vld [vmem:[#allocation5 + $0x2c] ss:$16 sps:$4 sm:$0xff]  }
  0x56   : > { %v1040_v27 = vld [vmem:[#allocation5 + $0x20] ss:$16 sps:$4 sm:$0xff]   ;;  %v1044_v28 = vld [vmem:[#allocation5 + $0x4] ss:$16 sps:$4 sm:$0xff]   ;;  %v1043_v29 = vld [vmem:[#allocation5 + $0x28] ss:$16 sps:$4 sm:$0xff]  }
  0x57   : > { %v1047_v30 = vld [vmem:[#allocation5 + $0xc] ss:$16 sps:$4 sm:$0xff]   ;;  %v1046_v31 = vld [vmem:[#allocation5] ss:$16 sps:$4 sm:$0xff]   ;;  %v1049_v32 = vld [vmem:[#allocation5 + $0x8] ss:$16 sps:$4 sm:$0xff]  }
  0x58   : > { %452 = vmatpush1.bf16.msra.mxu0 %v1016_v10  ;;  %493 = vmatpush1.bf16.msra.mxu1 %v1019_v13  ;;  %v253_v33 = vld [vmem:[%s1397_s11] sm:$0xf]  ;;  %v1228_v34 = vmov 0.0   ;;  %v254_v35 = vld [vmem:[%s1407_s22] sm:$0xf]  ;;  %vm1229_vm0 = vmmov 0  }
  0x59   : > { %453 = vmatprep.subr.bf16.mxu0 %v1020_v12  ;;  %494 = vmatprep.subr.bf16.mxu1 %v1023_v14  ;;  %s843_s10 = sshll.u32 %s1394_s4, 5  ;;  %vm573_vm1 = vcmask 64512   ;;  %s884_s8 = sshll.u32 %s1212_s15, 9 }
  0x5a   : > { %s251_s19 = scalar_lea.vmem [#allocation8], %s843_s10  ;;  %s1428_s25 = scalar_lea.hbm %s1481_s3, %s884_s8 }
  0x5b   : > { %s716_s27 = sshll.u32 %s251_s19, 4  ;;  %s702_s15 = scalar_lea.sflag [#allocation4], %s1394_s4  ;;  %s1423_s27 = int_to_ptr.vmem [resolvable:$true] %s716_s27 }
  0x5c   : > { %454 = vmatpush1.bf16.msra.mxu0 %v1022_v15  ;;  %495 = vmatpush1.bf16.msra.mxu1 %v1025_v17  ;;  %s1132_s28 = scalar_lea.vmem %s1423_s27, 512  ;;  %p1494_p2 = scmp.ne.s32.totalorder %s1487_s20, 0 }
  0x5d   : > { %455 = vmatprep.subr.bf16.mxu0 %v1026_v16  ;;  %496 = vmatprep.subr.bf16.mxu1 %v1029_v18  ;;  %p1133_p12 = scmp.ne.s32.totalorder %s1423_s27, %s1132_s28  ;;  %s1230_s29 = smov [#allocation8]  }
  0x5e   : > { %s1136_s30 = sshll.u32 %s1230_s29, 4  ;;  %s1137_s30 = int_to_ptr.vmem [resolvable:$false] %s1136_s30 }
  0x5f   : > { %p1134_p4 = pnand %p1133_p12, %p1494_p2  ;;  %s1138_s6 = scalar_lea.vmem %s1137_s30, 1024 }
  0x60   : > { %456 = vmatpush1.bf16.msra.mxu0 %v1028_v19  ;;  %497 = vmatpush1.bf16.msra.mxu1 %v1031_v21  ;;  %p1139_p0 = scmp.lt.s32.totalorder %s1423_s27, %s1137_s30  ;;  %p1140_p8 = scmp.lt.s32.totalorder %s1138_s6, %s1132_s28 }
  0x61   : > { %457 = vmatprep.subr.bf16.mxu0 %v1032_v20  ;;  %498 = vmatprep.subr.bf16.mxu1 %v1035_v22  ;;  %p1135_p10 = pneg %p1134_p4 }
  0x62   : > { %p1141_p1 = por %p1140_p8, %p1139_p0 }
  0x64   : > { %458 = vmatpush1.bf16.msra.mxu0 %v1034_v23  ;;  %499 = vmatpush1.bf16.msra.mxu1 %v1037_v25  ;;  %p1142_p6 = pnand %p1141_p1, %p1135_p10 }
  0x65   : > { %459 = vmatprep.subr.bf16.mxu0 %v1038_v24  ;;  %500 = vmatprep.subr.bf16.mxu1 %v1041_v26 }
  0x68   : > { %460 = vmatpush1.bf16.msra.mxu0 %v1040_v27  ;;  %501 = vmatpush1.bf16.msra.mxu1 %v1043_v29 }
  0x69   : > { %461 = vmatprep.subr.bf16.mxu0 %v1044_v28  ;;  %502 = vmatprep.subr.bf16.mxu1 %v1047_v30 }
  0x6c   : > { %462 = vmatpush1.bf16.msra.mxu0 %v1046_v31  ;;  %503 = vmatpush1.bf16.msra.mxu1 %v1049_v32 }
  0x6d   : > { %893 = vmatprep.subr.bf16.mxu0 %v1228_v34  ;;  %899 = vmatprep.subr.bf16.mxu1 %v1228_v34 }
  0x6f   : > { %480 = vmatmul.mubr.bf16.vlgmr.msra.gmra.mxu0 %v253_v33  ;;  %521 = vmatmul.mubr.bf16.vlgmr.msra.gmra.mxu1 %v253_v33 }
  0x70   : > { %894 = vmatpush3.bf16.xpose.msra.mxu0 %v254_v35  ;;  %900 = vmatpush3.bf16.xpose.msra.mxu1 %v254_v35 }
  0x71   : > { %905 = vmatprep.subr.bf16.mxu0 %v1228_v34  ;;  %911 = vmatprep.subr.bf16.mxu1 %v1228_v34 }
  0x72   : > { %895 = vmatprep.mubr.msk.bf16.mxu0 %vm1229_vm0, %v1228_v34  ;;  %901 = vmatprep.mubr.msk.bf16.mxu1 %vm1229_vm0, %v1228_v34 }
 0x12f   : > { %v481_v36 = vpop.f32.mrf.mxu0  ;;  %v522_v39 = vpop.f32.mrf.mxu1 }
 0x130   : > { %v529_v37 = vpack.c.bf16 %v481_v36, %v481_v36  ;;  %v531_v45 = vpack.c.bf16 %v522_v39, %v522_v39 }
 0x131   : > { %v483_v38 = vpop.f32.mrf.mxu0  ;;  %v524_v42 = vpop.f32.mrf.mxu1 }
 0x132   : > { %v530_v40 = vpack.c.bf16 %v483_v38, %v483_v38  ;;  %896 = vmatmul.mubr.bf16.vlgmr.msra.gmra.mxu0 %v529_v37  ;;  %v532_v47 = vpack.c.bf16 %v524_v42, %v524_v42 }
 0x133   : > { %v485_v41 = vpop.f32.mrf.mxu0  ;;  %906 = vmatpush3.bf16.xpose.msra.mxu0 %v254_v35  ;;  %907 = vmatprep.mubr.msk.bf16.mxu0 %vm1229_vm0, %v1228_v34  ;;  %v526_v44 = vpop.f32.mrf.mxu1 }
 0x134   : > { %902 = vmatmul.mubr.bf16.vlgmr.msra.gmra.mxu1 %v530_v40 }
 0x135   : > { %912 = vmatpush3.bf16.xpose.msra.mxu1 %v254_v35  ;;  %v486_v43 = vpop.f32.mrf.mxu0  ;;  %913 = vmatprep.mubr.msk.bf16.mxu1 %vm1229_vm0, %v1228_v34  ;;  %v527_v46 = vpop.f32.mrf.mxu1 }
 0x13a   : > { %908 = vmatmul.mubr.bf16.vlgmr.msra.gmra.mxu0 %v531_v45 }
 0x13c   : > { %914 = vmatmul.mubr.bf16.vlgmr.msra.gmra.mxu1 %v532_v47 }
 0x1f2   : > { %v567_v48 = vpop.f32.mrf.mxu0 }
 0x1f3   : > { %574 = vst.msk [vmem:[%s251_s19] sm:$0xff] %vm573_vm1, %v567_v48 }
 0x1f4   : > { %v897_v49 = vpop.f32.mrf.mxu0  ;;  %v609_v50 = vpop.f32.mrf.mxu1 }
 0x1f5   : > { %876 = vst.msk [vmem:[%s251_s19 + $0x8] sm:$0xff] %vm573_vm1, %v609_v50 }
 0x1f6   : > { %v570_v51 = vpop.f32.mrf.mxu0  ;;  %v903_v52 = vpop.f32.mrf.mxu1 }
 0x1f8   : > { %v898_v53 = vpop.f32.mrf.mxu0  ;;  %v612_v54 = vpop.f32.mrf.mxu1 }
 0x1fa   : > { %v904_v55 = vpop.f32.mrf.mxu1  ;;  %v651_v56 = vpop.f32.mrf.mxu0 }
 0x1fb   : > { %877 = vst.msk [vmem:[%s251_s19 + $0x10] sm:$0xff] %vm573_vm1, %v651_v56 }
 0x1fc   : > { %v909_v57 = vpop.f32.mrf.mxu0  ;;  %v693_v58 = vpop.f32.mrf.mxu1 }
 0x1fd   : > { %878 = vst.msk [vmem:[%s251_s19 + $0x18] sm:$0xff] %vm573_vm1, %v693_v58 }
 0x1fe   : > { %v654_v59 = vpop.f32.mrf.mxu0  ;;  %v915_v60 = vpop.f32.mrf.mxu1 }
 0x1ff   : > { %1145 = shalt.err (!%p1142_p6)
}
 0x200   : > { %s1146_s5 = scalar_lea.hbm %s1428_s25, 512  ;;  %s1150_s11 = scalar_lea.hbm %s1481_s3, 1024 }
 0x201   : > { %p1147_p9 = scmp.ne.s32.totalorder %s1428_s25, %s1146_s5  ;;  %p1151_p7 = scmp.lt.s32.totalorder %s1428_s25, %s1481_s3 }
 0x202   : > { %p1152_p5 = scmp.lt.s32.totalorder %s1150_s11, %s1146_s5 }
 0x203   : > { %p1148_p3 = pnand %p1147_p9, %p1494_p2 }
 0x204   : > { %p1153_p11 = por %p1152_p5, %p1151_p7 }
 0x205   : > { %p1149_p13 = pneg %p1148_p3 }
 0x207   : > { %p1154_p12 = pnand %p1153_p11, %p1149_p13 }
 0x209   : > { %1157 = shalt.err (!%p1154_p12)
}
 0x20a   : > { %s1231_s19 = smov 128   ;;  %s1232_s8 = smov 8   ;;  %v910_v61 = vpop.f32.mrf.mxu0  ;;  %v696_v62 = vpop.f32.mrf.mxu1 }
 0x20b   : > { %925 = dma.vmem_to_hbm [thread:$0]  (%p1494_p2), %s1423_s27, 512, %s1428_s25, %s702_s15, %s1231_s19, %s1231_s19, %s1232_s8  }
 0x20c   : > { %v916_v63 = vpop.f32.mrf.mxu1 }
 0x20d PF: > { %s731_s23 = sand.u32 1, %s1200_s12   ;;  %p1495_p4 = scmp.ne.s32.totalorder %s1488_s21, 0 }
 0x20e   : > { %p1496_p10 = scmp.ge.s32.totalorder %s1220_s17, 2  ;;  %s732_s26 = scalar_lea.sflag [#allocation4], %s731_s23 }
 0x210   : > { %p939_p0 = pnand %p1496_p10, %p1495_p4 }
 0x212   : > { %p940_p8 = pneg %p939_p0 }
 0x214   : > { %1195 = dma.done.wait (%p940_p8), %s732_s26, 512  }
 0x215   : > { %1197 = vsyncadd (%p940_p8), %s732_s26, 4294966784  ;;  %s20_s17 = sadd.s32 1, %s1220_s17   ;;  %s1497_s12 = smov %s1204_s13 }
 0x216   : > { %p17_p1 = scmp.ge.s32.totalorder %s20_s17, 4   ;;  %s1498_s13 = smov %s1208_s14 }
 0x217   : > { %s1499_s14 = smov %s1301_s24  ;;  %s1500_s15 = smov %s1216_s16 }
 0x218   : > { %s1501_s16 = smov %s1503_s18  ;;  %19 = sbr.rel (!%p17_p1) target bundleno = 7 (0x7), region = 95 }
 0x21d   :  { %737 = vsyncpa [#allocation3], 1 }
 0x21e   :  { %739 = vsyncpa [#allocation3 + $0x1], 1 }
 0x21f   :  { %740 = vsyncpa [#allocation6], 1 }
 0x220   :  { %741 = vsyncpa [#allocation4], 1 }
 0x221   :  { %743 = vsyncpa [#allocation4 + $0x1], 1 }

</bundles_post_ra>
